<compile_context>
chip_gen: v7x
topology: tpu7x:2x2x1
jax: 0.10.0
libtpu: 0.0.40
codegen_flags: <defaults>
</compile_context>

<pallas_src>
import functools

import jax
import jax.numpy as jnp
from jax.experimental import pallas as pl
from jax.experimental.pallas import tpu as pltpu

K_IN = 2048   # in_features of the Linear layer
N_OUT = 12    # out_features of the Linear layer


def _round_up(x: int, m: int) -> int:
    return (x + m - 1) // m * m


def final_layer_kernel(x_ref, w_ref, b_ref, o_ref):
    # MXU matmul with f32 accumulation (rhs is 12-wide; Mosaic lane-pads in VMEM),
    # bias broadcast on VPU, sigmoid exp on EUP. Store is narrow (12 lanes).
    y = jnp.dot(x_ref[...], w_ref[...], preferred_element_type=jnp.float32)
    y = y + b_ref[...]                        # broadcast bias [1, 12] over batch tile
    o_ref[...] = jax.nn.sigmoid(y).astype(o_ref.dtype)


@functools.partial(jax.jit, static_argnames=("max_tile",))
def final_layer(x, w, b, *, max_tile: int = 512):
    """x: [B, 2048] f32, w: [2048, 12] f32 (pre-transposed), b: [12] f32 -> [B, 12] f32."""
    B, K = x.shape
    K2, N = w.shape
    assert K == K2 == K_IN and N == N_OUT

    b2 = b.reshape(1, N)   # metadata-only reshape, no HBM copy

    # Batch tile: split the batch into >= 2 tiles whenever possible (so v7x can
    # shard them across its two TensorCores), cap at max_tile=512 rows so the
    # double-buffered f32 x tiles (2 x 4 MiB) + resident weight + output stay
    # well under every generation's default scoped-VMEM limit (16 MiB on v5e).
    TB = min(max_tile, max(8, _round_up(pl.cdiv(B, 2), 8)))
    grid = (pl.cdiv(B, TB),)   # ragged last tile handled by Pallas (masked writeback)

    cost = pl.CostEstimate(
        flops=2 * B * K * N,
        transcendentals=B * N,
        bytes_accessed=B * K * 4 + K * N * 4 + B * N * 4 + N * 4,
    )

    return pl.pallas_call(
        final_layer_kernel,
        out_shape=jax.ShapeDtypeStruct((B, N), x.dtype),
        grid_spec=pltpu.PrefetchScalarGridSpec(
            num_scalar_prefetch=0,
            grid=grid,
            in_specs=[
                pl.BlockSpec((TB, K), lambda i: (i, 0)),   # stream x tiles (double-buffered)
                pl.BlockSpec((K, N), lambda i: (0, 0)),    # weight resident across grid
                pl.BlockSpec((1, N), lambda i: (0, 0)),    # bias resident across grid
            ],
            out_specs=pl.BlockSpec((TB, N), lambda i: (i, 0)),   # narrow lane-12 output
        ),
        compiler_params=pltpu.CompilerParams(
            dimension_semantics=("parallel",),             # megacore-friendly on v7x
        ),
        cost_estimate=cost,
    )(x, w, b2)


if __name__ == "__main__":
    key = jax.random.PRNGKey(0)
    kx, kw, kb = jax.random.split(key, 3)

    B = 8

    # Deterministic parameter init mimicking nn.Linear default (uniform +/- 1/sqrt(K)).
    bound = 1.0 / jnp.sqrt(jnp.float32(K_IN))
    w = jax.random.uniform(kw, (K_IN, N_OUT), jnp.float32, minval=-bound, maxval=bound)
    b = jax.random.uniform(kb, (N_OUT,), jnp.float32, minval=-bound, maxval=bound)

    x = jax.random.normal(kx, (B, K_IN), jnp.float32)

    out = jax.block_until_ready(final_layer(x, w, b))

    # Reference check in plain JAX.
    ref = jax.nn.sigmoid(x @ w + b)
    assert out.shape == (B, N_OUT)
    assert jnp.allclose(out, ref, atol=1e-5, rtol=1e-5)

    # Also exercise a batch that is neither a multiple of 8 nor of the tile size
    # (ragged last block, no padding copy made).
    x2 = jax.random.normal(jax.random.PRNGKey(1), (37, K_IN), jnp.float32)
    out2 = jax.block_until_ready(final_layer(x2, w, b))
    ref2 = jax.nn.sigmoid(x2 @ w + b)
    assert out2.shape == (37, N_OUT)
    assert jnp.allclose(out2, ref2, atol=1e-5, rtol=1e-5)

    print("KERNEL_OK")
</pallas_src>

<mosaic_0001>
module attributes {stable_mosaic.version = 11 : i64} {
  func.func @final_layer_kernel(%arg0: i32, %arg1: memref<8x2048xf32, #tpu.memory_space<vmem>>, %arg2: memref<2048x12xf32, #tpu.memory_space<vmem>>, %arg3: memref<1x12xf32, #tpu.memory_space<vmem>>, %arg4: memref<8x12xf32, #tpu.memory_space<vmem>>) attributes {dimension_semantics = [#tpu.dimension_semantics<parallel>], iteration_bounds = array<i64: 1>, scalar_prefetch = 0 : i64, scratch_operands = 0 : i64, tpu.core_type = #tpu.core_type<tc>, window_params = [{transform_indices = @transform_0, window_bounds = array<i64: 8, 2048>}, {pipeline_mode = #tpu.pipeline_mode<synchronous>, transform_indices = @transform_1, window_bounds = array<i64: 2048, 12>}, {pipeline_mode = #tpu.pipeline_mode<synchronous>, transform_indices = @transform_2, window_bounds = array<i64: 1, 12>}, {transform_indices = @transform_3, window_bounds = array<i64: 8, 12>}]} {
    %c0 = arith.constant 0 : index
    %c0_0 = arith.constant 0 : index
    %0 = vector.load %arg1[%c0, %c0_0] : memref<8x2048xf32, #tpu.memory_space<vmem>>, vector<8x2048xf32>
    %c0_1 = arith.constant 0 : index
    %c0_2 = arith.constant 0 : index
    %1 = vector.load %arg2[%c0_1, %c0_2] : memref<2048x12xf32, #tpu.memory_space<vmem>>, vector<2048x12xf32>
    %cst = arith.constant dense<0.000000e+00> : vector<8x12xf32>
    %2 = tpu.matmul %0, %1, %cst {dimension_numbers = #tpu.dot_dimension_numbers<[1], [0], [0], [1], [0, 0, 1, 1], [], []>} : vector<8x2048xf32>, vector<2048x12xf32>, vector<8x12xf32> -> vector<8x12xf32>
    %c0_3 = arith.constant 0 : index
    %c0_4 = arith.constant 0 : index
    %3 = vector.load %arg3[%c0_3, %c0_4] : memref<1x12xf32, #tpu.memory_space<vmem>>, vector<1x12xf32>
    %4 = vector.broadcast %3 : vector<1x12xf32> to vector<8x12xf32>
    %5 = arith.addf %2, %4 : vector<8x12xf32>
    %6 = arith.negf %5 : vector<8x12xf32>
    %7 = math.exp %6 : vector<8x12xf32>
    %cst_5 = arith.constant 1.000000e+00 : f32
    %8 = vector.broadcast %cst_5 : f32 to vector<8x12xf32>
    %9 = arith.addf %8, %7 : vector<8x12xf32>
    %10 = arith.divf %8, %9 : vector<8x12xf32>
    %c0_6 = arith.constant 0 : index
    %c0_7 = arith.constant 0 : index
    %11 = vector.load %arg4[%c0_6, %c0_7] : memref<8x12xf32, #tpu.memory_space<vmem>>, vector<8x12xf32>
    tpu.vector_store %arg4[%c0_6, %c0_7], %10 {strides = array<i32>} : memref<8x12xf32, #tpu.memory_space<vmem>>, vector<8x12xf32>,
    return
  }
  func.func @transform_0(%arg0: i32) -> (i32, i32) {
    %c0_i32 = arith.constant 0 : i32
    %c0_i32_0 = arith.constant 0 : i32
    return %arg0, %c0_i32 : i32, i32
  }
  func.func @transform_1(%arg0: i32) -> (i32, i32) {
    %c0_i32 = arith.constant 0 : i32
    %c0_i32_0 = arith.constant 0 : i32
    %c0_i32_1 = arith.constant 0 : i32
    return %c0_i32, %c0_i32_0 : i32, i32
  }
  func.func @transform_2(%arg0: i32) -> (i32, i32) {
    %c0_i32 = arith.constant 0 : i32
    %c0_i32_0 = arith.constant 0 : i32
    %c0_i32_1 = arith.constant 0 : i32
    return %c0_i32, %c0_i32_0 : i32, i32
  }
  func.func @transform_3(%arg0: i32) -> (i32, i32) {
    %c0_i32 = arith.constant 0 : i32
    %c0_i32_0 = arith.constant 0 : i32
    return %arg0, %c0_i32 : i32, i32
  }
}

</mosaic_0001>

<bundles_post_ra>
// kernel: final_layer.1
= control target key start
LH: loop header
LB: loop body
LE: loop exit
PB: predicated region body
PF: predicated region fallthrough
CT: control target
= control target key end

     0   :  { %s2295_s0 = inlined_call_operand.vmem [shape: f32[8,2048], index: 0, kind: input, shape index: {}]   ;;  %s2296_s1 = inlined_call_operand.vmem [shape: f32[2048,12], index: 1, kind: input, shape index: {}]   ;;  %s2297_s2 = inlined_call_operand.vmem [shape: f32[1,12], index: 2, kind: input, shape index: {}]   ;;  %s2298_s3 = inlined_call_operand.hbm [shape: f32[8,12], index: 3, kind: output, shape index: {}]  }
   0x1   :  { %v47_v0 = vld [vmem:[%s2296_s1 + $0x80] sm:$0xff]  ;;  %v48_v1 = vld [vmem:[%s2296_s1 + $0x88] sm:$0xff]  ;;  %v49_v11 = vld [vmem:[%s2296_s1 + $0x90] sm:$0xff] }
   0x2   :  { %v31_v2 = vld [vmem:[%s2296_s1] sm:$0xff]  ;;  %v1158_v3 = vpack.c.bf16 %v48_v1, %v47_v0  ;;  %v32_v4 = vld [vmem:[%s2296_s1 + $0x8] sm:$0xff]  ;;  %v50_v13 = vld [vmem:[%s2296_s1 + $0x98] sm:$0xff] }
   0x3   :  { %v79_v5 = vld [vmem:[%s2296_s1 + $0x180] sm:$0xff]  ;;  %v80_v6 = vld [vmem:[%s2296_s1 + $0x188] sm:$0xff]  ;;  %v1160_v7 = vpack.c.bf16 %v32_v4, %v31_v2  ;;  %v33_v14 = vld [vmem:[%s2296_s1 + $0x10] sm:$0xff]  ;;  %v1162_v16 = vpack.c.bf16 %v50_v13, %v49_v11 }
   0x4   :  { %v1190_v8 = vpack.c.bf16 %v80_v6, %v79_v5  ;;  %v63_v9 = vld [vmem:[%s2296_s1 + $0x100] sm:$0xff]  ;;  %v64_v10 = vld [vmem:[%s2296_s1 + $0x108] sm:$0xff]  ;;  %1159 = vmatprep.subr.bf16.mxu0 %v1158_v3  ;;  %v34_v15 = vld [vmem:[%s2296_s1 + $0x18] sm:$0xff] }
   0x5   :  { %v1192_v12 = vpack.c.bf16 %v64_v10, %v63_v9  ;;  %1161 = vmatpush3.bf16.msra.mxu0 %v1160_v7  ;;  %v1164_v17 = vpack.c.bf16 %v34_v15, %v33_v14  ;;  %v81_v18 = vld [vmem:[%s2296_s1 + $0x190] sm:$0xff]  ;;  %v82_v19 = vld [vmem:[%s2296_s1 + $0x198] sm:$0xff]  ;;  %v51_v23 = vld [vmem:[%s2296_s1 + $0xa0] sm:$0xff] }
   0x6   :  { %1191 = vmatprep.subr.bf16.mxu1 %v1190_v8  ;;  %v65_v20 = vld [vmem:[%s2296_s1 + $0x110] sm:$0xff]  ;;  %v1194_v21 = vpack.c.bf16 %v82_v19, %v81_v18  ;;  %v66_v22 = vld [vmem:[%s2296_s1 + $0x118] sm:$0xff]  ;;  %v52_v24 = vld [vmem:[%s2296_s1 + $0xa8] sm:$0xff]  ;;  %1163 = vmatprep.subr.bf16.mxu0 %v1162_v16 }
   0x7   :  { %1193 = vmatpush3.bf16.msra.mxu1 %v1192_v12  ;;  %v1196_v25 = vpack.c.bf16 %v66_v22, %v65_v20  ;;  %v1166_v26 = vpack.c.bf16 %v52_v24, %v51_v23  ;;  %v35_v27 = vld [vmem:[%s2296_s1 + $0x20] sm:$0xff]  ;;  %v36_v28 = vld [vmem:[%s2296_s1 + $0x28] sm:$0xff]  ;;  %v53_v35 = vld [vmem:[%s2296_s1 + $0xb0] sm:$0xff] }
   0x8   :  { %v83_v29 = vld [vmem:[%s2296_s1 + $0x1a0] sm:$0xff]  ;;  %1195 = vmatprep.subr.bf16.mxu1 %v1194_v21  ;;  %v84_v30 = vld [vmem:[%s2296_s1 + $0x1a8] sm:$0xff]  ;;  %v1168_v33 = vpack.c.bf16 %v36_v28, %v35_v27  ;;  %v54_v36 = vld [vmem:[%s2296_s1 + $0xb8] sm:$0xff] }
   0x9   :  { %v67_v31 = vld [vmem:[%s2296_s1 + $0x120] sm:$0xff]  ;;  %v68_v32 = vld [vmem:[%s2296_s1 + $0x128] sm:$0xff]  ;;  %1165 = vmatpush3.bf16.msra.mxu0 %v1164_v17  ;;  %v1198_v34 = vpack.c.bf16 %v84_v30, %v83_v29  ;;  %v37_v37 = vld [vmem:[%s2296_s1 + $0x30] sm:$0xff]  ;;  %v1170_v39 = vpack.c.bf16 %v54_v36, %v53_v35 }
   0xa   :  { %1167 = vmatprep.subr.bf16.mxu0 %v1166_v26  ;;  %v1200_v38 = vpack.c.bf16 %v68_v32, %v67_v31  ;;  %v38_v40 = vld [vmem:[%s2296_s1 + $0x38] sm:$0xff]  ;;  %v85_v41 = vld [vmem:[%s2296_s1 + $0x1b0] sm:$0xff]  ;;  %v55_v46 = vld [vmem:[%s2296_s1 + $0xc0] sm:$0xff] }
   0xb   :  { %1197 = vmatpush3.bf16.msra.mxu1 %v1196_v25  ;;  %v86_v42 = vld [vmem:[%s2296_s1 + $0x1b8] sm:$0xff]  ;;  %v69_v44 = vld [vmem:[%s2296_s1 + $0x130] sm:$0xff]  ;;  %v56_v47 = vld [vmem:[%s2296_s1 + $0xc8] sm:$0xff]  ;;  %v1172_v48 = vpack.c.bf16 %v38_v40, %v37_v37 }
   0xc   :  { %1199 = vmatprep.subr.bf16.mxu1 %v1198_v34  ;;  %v1202_v43 = vpack.c.bf16 %v86_v42, %v85_v41  ;;  %v70_v45 = vld [vmem:[%s2296_s1 + $0x138] sm:$0xff]  ;;  %v87_v49 = vld [vmem:[%s2296_s1 + $0x1c0] sm:$0xff]  ;;  %v88_v50 = vld [vmem:[%s2296_s1 + $0x1c8] sm:$0xff]  ;;  %v1174_v52 = vpack.c.bf16 %v56_v47, %v55_v46 }
   0xd   :  { %1169 = vmatpush3.bf16.msra.mxu0 %v1168_v33  ;;  %v1204_v51 = vpack.c.bf16 %v70_v45, %v69_v44  ;;  %v39_v53 = vld [vmem:[%s2296_s1 + $0x40] sm:$0xff]  ;;  %v40_v54 = vld [vmem:[%s2296_s1 + $0x48] sm:$0xff]  ;;  %v1206_v56 = vpack.c.bf16 %v88_v50, %v87_v49  ;;  %v57_v58 = vld [vmem:[%s2296_s1 + $0xd0] sm:$0xff] }
   0xe   :  { %1171 = vmatprep.subr.bf16.mxu0 %v1170_v39  ;;  %v71_v55 = vld [vmem:[%s2296_s1 + $0x140] sm:$0xff]  ;;  %v72_v57 = vld [vmem:[%s2296_s1 + $0x148] sm:$0xff]  ;;  %v58_v59 = vld [vmem:[%s2296_s1 + $0xd8] sm:$0xff]  ;;  %v1176_v62 = vpack.c.bf16 %v40_v54, %v39_v53 }
   0xf   :  { %1201 = vmatpush3.bf16.msra.mxu1 %v1200_v38  ;;  %v89_v60 = vld [vmem:[%s2296_s1 + $0x1d0] sm:$0xff]  ;;  %v90_v61 = vld [vmem:[%s2296_s1 + $0x1d8] sm:$0xff]  ;;  %v1208_v63 = vpack.c.bf16 %v72_v57, %v71_v55  ;;  %v1178_v0 = vpack.c.bf16 %v58_v59, %v57_v58  ;;  %v59_v6 = vld [vmem:[%s2296_s1 + $0xe0] sm:$0xff] }
  0x10   :  { %1203 = vmatprep.subr.bf16.mxu1 %v1202_v43  ;;  %v41_v1 = vld [vmem:[%s2296_s1 + $0x50] sm:$0xff]  ;;  %v42_v2 = vld [vmem:[%s2296_s1 + $0x58] sm:$0xff]  ;;  %v1210_v4 = vpack.c.bf16 %v90_v61, %v89_v60  ;;  %v60_v7 = vld [vmem:[%s2296_s1 + $0xe8] sm:$0xff] }
  0x11   :  { %1173 = vmatpush3.bf16.msra.mxu0 %v1172_v48  ;;  %v73_v3 = vld [vmem:[%s2296_s1 + $0x150] sm:$0xff]  ;;  %v74_v5 = vld [vmem:[%s2296_s1 + $0x158] sm:$0xff]  ;;  %v91_v8 = vld [vmem:[%s2296_s1 + $0x1e0] sm:$0xff]  ;;  %v1180_v10 = vpack.c.bf16 %v42_v2, %v41_v1  ;;  %v1182_v14 = vpack.c.bf16 %v60_v7, %v59_v6 }
  0x12   :  { %1175 = vmatprep.subr.bf16.mxu0 %v1174_v52  ;;  %v92_v9 = vld [vmem:[%s2296_s1 + $0x1e8] sm:$0xff]  ;;  %v43_v11 = vld [vmem:[%s2296_s1 + $0x60] sm:$0xff]  ;;  %v1212_v13 = vpack.c.bf16 %v74_v5, %v73_v3  ;;  %v61_v19 = vld [vmem:[%s2296_s1 + $0xf0] sm:$0xff] }
  0x13   :  { %1205 = vmatpush3.bf16.msra.mxu1 %v1204_v51  ;;  %v44_v12 = vld [vmem:[%s2296_s1 + $0x68] sm:$0xff]  ;;  %v75_v15 = vld [vmem:[%s2296_s1 + $0x160] sm:$0xff]  ;;  %v1214_v18 = vpack.c.bf16 %v92_v9, %v91_v8  ;;  %v62_v20 = vld [vmem:[%s2296_s1 + $0xf8] sm:$0xff] }
  0x14   :  { %1207 = vmatprep.subr.bf16.mxu1 %v1206_v56  ;;  %v76_v16 = vld [vmem:[%s2296_s1 + $0x168] sm:$0xff]  ;;  %v18_v21 = vld [vmem:[%s2295_s0 + $0x18] sm:$0xff]  ;;  %v93_v22 = vld [vmem:[%s2296_s1 + $0x1f0] sm:$0xff]  ;;  %v1184_v24 = vpack.c.bf16 %v44_v12, %v43_v11  ;;  %v1186_v26 = vpack.c.bf16 %v62_v20, %v61_v19 }
  0x15   :  { %1177 = vmatpush3.bf16.msra.mxu0 %v1176_v62  ;;  %v16_v17 = vld [vmem:[%s2295_s0 + $0x8] sm:$0xff]  ;;  %v94_v23 = vld [vmem:[%s2296_s1 + $0x1f8] sm:$0xff]  ;;  %428 = vmatprep.mubr.f32.mxu1 %v18_v21  ;;  %v1216_v25 = vpack.c.bf16 %v76_v16, %v75_v15  ;;  %v45_v27 = vld [vmem:[%s2296_s1 + $0x70] sm:$0xff] }
  0x16   :  { %1179 = vmatprep.subr.bf16.mxu0 %v1178_v0  ;;  %358 = vmatprep.mubr.f32.mxu0 %v16_v17  ;;  %v46_v28 = vld [vmem:[%s2296_s1 + $0x78] sm:$0xff]  ;;  %v77_v29 = vld [vmem:[%s2296_s1 + $0x170] sm:$0xff]  ;;  %v1218_v30 = vpack.c.bf16 %v94_v23, %v93_v22  ;;  %v111_v32 = vld [vmem:[%s2296_s1 + $0x280] sm:$0xff] }
  0x17   :  { %1209 = vmatpush3.bf16.msra.mxu1 %v1208_v63  ;;  %v78_v31 = vld [vmem:[%s2296_s1 + $0x178] sm:$0xff]  ;;  %v112_v33 = vld [vmem:[%s2296_s1 + $0x288] sm:$0xff]  ;;  %v143_v34 = vld [vmem:[%s2296_s1 + $0x380] sm:$0xff]  ;;  %v1188_v36 = vpack.c.bf16 %v46_v28, %v45_v27 }
  0x18   :  { %1211 = vmatprep.subr.bf16.mxu1 %v1210_v4  ;;  %v144_v35 = vld [vmem:[%s2296_s1 + $0x388] sm:$0xff]  ;;  %v1220_v37 = vpack.c.bf16 %v78_v31, %v77_v29  ;;  %v1222_v38 = vpack.c.bf16 %v112_v33, %v111_v32  ;;  %v95_v39 = vld [vmem:[%s2296_s1 + $0x200] sm:$0xff]  ;;  %v113_v44 = vld [vmem:[%s2296_s1 + $0x290] sm:$0xff] }
  0x19   :  { %1181 = vmatpush3.bf16.msra.mxu0 %v1180_v10  ;;  %v96_v40 = vld [vmem:[%s2296_s1 + $0x208] sm:$0xff]  ;;  %v127_v41 = vld [vmem:[%s2296_s1 + $0x300] sm:$0xff]  ;;  %v1254_v42 = vpack.c.bf16 %v144_v35, %v143_v34  ;;  %v114_v45 = vld [vmem:[%s2296_s1 + $0x298] sm:$0xff] }
  0x1a   :  { %1183 = vmatprep.subr.bf16.mxu0 %v1182_v14  ;;  %v128_v43 = vld [vmem:[%s2296_s1 + $0x308] sm:$0xff]  ;;  %v145_v46 = vld [vmem:[%s2296_s1 + $0x390] sm:$0xff]  ;;  %v146_v47 = vld [vmem:[%s2296_s1 + $0x398] sm:$0xff]  ;;  %v1224_v49 = vpack.c.bf16 %v96_v40, %v95_v39  ;;  %v1226_v52 = vpack.c.bf16 %v114_v45, %v113_v44 }
  0x1b   :  { %1213 = vmatpush3.bf16.msra.mxu1 %v1212_v13  ;;  %v15_v48 = vld [vmem:[%s2295_s0] sm:$0xff]  ;;  %v17_v50 = vld [vmem:[%s2295_s0 + $0x10] sm:$0xff]  ;;  %v1256_v51 = vpack.c.bf16 %v128_v43, %v127_v41  ;;  %v98_v54 = vld [vmem:[%s2296_s1 + $0x218] sm:$0xff]  ;;  %v1258_v56 = vpack.c.bf16 %v146_v47, %v145_v46 }
  0x1c   :  { %1215 = vmatprep.subr.bf16.mxu1 %v1214_v18  ;;  %v97_v53 = vld [vmem:[%s2296_s1 + $0x210] sm:$0xff]  ;;  %v130_v57 = vld [vmem:[%s2296_s1 + $0x318] sm:$0xff]  ;;  %v115_v58 = vld [vmem:[%s2296_s1 + $0x2a0] sm:$0xff] }
  0x1d   :  { %1185 = vmatpush3.bf16.msra.mxu0 %v1184_v24  ;;  %v129_v55 = vld [vmem:[%s2296_s1 + $0x310] sm:$0xff]  ;;  %v116_v59 = vld [vmem:[%s2296_s1 + $0x2a8] sm:$0xff]  ;;  %v147_v60 = vld [vmem:[%s2296_s1 + $0x3a0] sm:$0xff]  ;;  %v1228_v62 = vpack.c.bf16 %v98_v54, %v97_v53 }
  0x1e   :  { %1187 = vmatprep.subr.bf16.mxu0 %v1186_v26  ;;  %v148_v61 = vld [vmem:[%s2296_s1 + $0x3a8] sm:$0xff]  ;;  %v1260_v63 = vpack.c.bf16 %v130_v57, %v129_v55  ;;  %v1230_v0 = vpack.c.bf16 %v116_v59, %v115_v58  ;;  %v99_v1 = vld [vmem:[%s2296_s1 + $0x220] sm:$0xff]  ;;  %v117_v6 = vld [vmem:[%s2296_s1 + $0x2b0] sm:$0xff] }
  0x1f   :  { %1217 = vmatpush3.bf16.msra.mxu1 %v1216_v25  ;;  %v100_v2 = vld [vmem:[%s2296_s1 + $0x228] sm:$0xff]  ;;  %v131_v3 = vld [vmem:[%s2296_s1 + $0x320] sm:$0xff]  ;;  %v1262_v4 = vpack.c.bf16 %v148_v61, %v147_v60  ;;  %v118_v7 = vld [vmem:[%s2296_s1 + $0x2b8] sm:$0xff] }
  0x20   :  { %1219 = vmatprep.subr.bf16.mxu1 %v1218_v30  ;;  %v132_v5 = vld [vmem:[%s2296_s1 + $0x328] sm:$0xff]  ;;  %v149_v8 = vld [vmem:[%s2296_s1 + $0x3b0] sm:$0xff]  ;;  %v150_v9 = vld [vmem:[%s2296_s1 + $0x3b8] sm:$0xff]  ;;  %v1232_v10 = vpack.c.bf16 %v100_v2, %v99_v1  ;;  %v1234_v12 = vpack.c.bf16 %v118_v7, %v117_v6 }
  0x21   :  { %1189 = vmatpush3.bf16.msra.mxu0 %v1188_v36  ;;  %v1264_v11 = vpack.c.bf16 %v132_v5, %v131_v3  ;;  %v101_v13 = vld [vmem:[%s2296_s1 + $0x230] sm:$0xff]  ;;  %v102_v14 = vld [vmem:[%s2296_s1 + $0x238] sm:$0xff]  ;;  %v1266_v16 = vpack.c.bf16 %v150_v9, %v149_v8  ;;  %v119_v18 = vld [vmem:[%s2296_s1 + $0x2c0] sm:$0xff] }
  0x22   :  { %1223 = vmatprep.subr.bf16.mxu0 %v1222_v38  ;;  %v133_v15 = vld [vmem:[%s2296_s1 + $0x330] sm:$0xff]  ;;  %v134_v17 = vld [vmem:[%s2296_s1 + $0x338] sm:$0xff]  ;;  %v120_v19 = vld [vmem:[%s2296_s1 + $0x2c8] sm:$0xff]  ;;  %v1236_v22 = vpack.c.bf16 %v102_v14, %v101_v13 }
  0x23   :  { %1221 = vmatpush3.bf16.msra.mxu1 %v1220_v37  ;;  %v151_v20 = vld [vmem:[%s2296_s1 + $0x3c0] sm:$0xff]  ;;  %v152_v21 = vld [vmem:[%s2296_s1 + $0x3c8] sm:$0xff]  ;;  %v1268_v25 = vpack.c.bf16 %v134_v17, %v133_v15  ;;  %v1238_v26 = vpack.c.bf16 %v120_v19, %v119_v18  ;;  %v22_v29 = vld [vmem:[%s2295_s0 + $0x38] sm:$0xff] }
  0x24   :  { %1255 = vmatprep.subr.bf16.mxu1 %v1254_v42  ;;  %359 = vmatmul.mubr.f32.vlgmr.msra.gmra.mrb[0].mxu0 %v15_v48  ;;  %v103_v23 = vld [vmem:[%s2296_s1 + $0x240] sm:$0xff]  ;;  %v20_v24 = vld [vmem:[%s2295_s0 + $0x28] sm:$0xff]  ;;  %v1270_v30 = vpack.c.bf16 %v152_v21, %v151_v20  ;;  %v121_v32 = vld [vmem:[%s2296_s1 + $0x2d0] sm:$0xff] }
  0x25   :  { %1225 = vmatpush3.bf16.msra.mxu0 %v1224_v49  ;;  %v104_v27 = vld [vmem:[%s2296_s1 + $0x248] sm:$0xff]  ;;  %v135_v28 = vld [vmem:[%s2296_s1 + $0x340] sm:$0xff]  ;;  %v122_v33 = vld [vmem:[%s2296_s1 + $0x2d8] sm:$0xff]  ;;  %498 = vmatprep.mubr.f32.mxu0 %v20_v24 }
  0x26   :  { %429 = vmatmul.mubr.f32.vlgmr.msra.gmra.mrb[0].mxu1 %v17_v50  ;;  %1227 = vmatprep.subr.bf16.mxu0 %v1226_v52  ;;  %v136_v31 = vld [vmem:[%s2296_s1 + $0x348] sm:$0xff]  ;;  %v153_v34 = vld [vmem:[%s2296_s1 + $0x3d0] sm:$0xff]  ;;  %v154_v35 = vld [vmem:[%s2296_s1 + $0x3d8] sm:$0xff]  ;;  %v1240_v36 = vpack.c.bf16 %v104_v27, %v103_v23  ;;  %v1242_v38 = vpack.c.bf16 %v122_v33, %v121_v32 }
  0x27   :  { %1257 = vmatpush3.bf16.msra.mxu1 %v1256_v51  ;;  %568 = vmatprep.mubr.f32.mxu1 %v22_v29  ;;  %v1272_v37 = vpack.c.bf16 %v136_v31, %v135_v28  ;;  %v105_v39 = vld [vmem:[%s2296_s1 + $0x250] sm:$0xff]  ;;  %v106_v40 = vld [vmem:[%s2296_s1 + $0x258] sm:$0xff]  ;;  %v1274_v42 = vpack.c.bf16 %v154_v35, %v153_v34  ;;  %v123_v44 = vld [vmem:[%s2296_s1 + $0x2e0] sm:$0xff] }
  0x28   :  { %1259 = vmatprep.subr.bf16.mxu1 %v1258_v56  ;;  %v137_v41 = vld [vmem:[%s2296_s1 + $0x350] sm:$0xff]  ;;  %v138_v43 = vld [vmem:[%s2296_s1 + $0x358] sm:$0xff]  ;;  %v124_v45 = vld [vmem:[%s2296_s1 + $0x2e8] sm:$0xff]  ;;  %v1244_v48 = vpack.c.bf16 %v106_v40, %v105_v39 }
  0x29   :  { %1229 = vmatpush3.bf16.msra.mxu0 %v1228_v62  ;;  %v155_v46 = vld [vmem:[%s2296_s1 + $0x3e0] sm:$0xff]  ;;  %v156_v47 = vld [vmem:[%s2296_s1 + $0x3e8] sm:$0xff]  ;;  %v1276_v49 = vpack.c.bf16 %v138_v43, %v137_v41  ;;  %v1246_v50 = vpack.c.bf16 %v124_v45, %v123_v44  ;;  %v125_v56 = vld [vmem:[%s2296_s1 + $0x2f0] sm:$0xff] }
  0x2a   :  { %1231 = vmatprep.subr.bf16.mxu0 %v1230_v0  ;;  %v107_v51 = vld [vmem:[%s2296_s1 + $0x260] sm:$0xff]  ;;  %v108_v52 = vld [vmem:[%s2296_s1 + $0x268] sm:$0xff]  ;;  %v1278_v54 = vpack.c.bf16 %v156_v47, %v155_v46  ;;  %v126_v57 = vld [vmem:[%s2296_s1 + $0x2f8] sm:$0xff] }
  0x2b   :  { %1261 = vmatpush3.bf16.msra.mxu1 %v1260_v63  ;;  %v139_v53 = vld [vmem:[%s2296_s1 + $0x360] sm:$0xff]  ;;  %v140_v55 = vld [vmem:[%s2296_s1 + $0x368] sm:$0xff]  ;;  %v157_v58 = vld [vmem:[%s2296_s1 + $0x3f0] sm:$0xff]  ;;  %v1248_v60 = vpack.c.bf16 %v108_v52, %v107_v51  ;;  %v1250_v62 = vpack.c.bf16 %v126_v57, %v125_v56 }
  0x2c   :  { %1263 = vmatprep.subr.bf16.mxu1 %v1262_v4  ;;  %v158_v59 = vld [vmem:[%s2296_s1 + $0x3f8] sm:$0xff]  ;;  %v1280_v61 = vpack.c.bf16 %v140_v55, %v139_v53  ;;  %v109_v63 = vld [vmem:[%s2296_s1 + $0x270] sm:$0xff]  ;;  %v175_v4 = vld [vmem:[%s2296_s1 + $0x480] sm:$0xff] }
  0x2d   :  { %1233 = vmatpush3.bf16.msra.mxu0 %v1232_v10  ;;  %v110_v0 = vld [vmem:[%s2296_s1 + $0x278] sm:$0xff]  ;;  %v141_v1 = vld [vmem:[%s2296_s1 + $0x370] sm:$0xff]  ;;  %v1282_v2 = vpack.c.bf16 %v158_v59, %v157_v58  ;;  %v176_v5 = vld [vmem:[%s2296_s1 + $0x488] sm:$0xff] }
  0x2e   :  { %1235 = vmatprep.subr.bf16.mxu0 %v1234_v12  ;;  %v142_v3 = vld [vmem:[%s2296_s1 + $0x378] sm:$0xff]  ;;  %v207_v6 = vld [vmem:[%s2296_s1 + $0x580] sm:$0xff]  ;;  %v208_v7 = vld [vmem:[%s2296_s1 + $0x588] sm:$0xff]  ;;  %v1252_v8 = vpack.c.bf16 %v110_v0, %v109_v63  ;;  %v1286_v10 = vpack.c.bf16 %v176_v5, %v175_v4 }
  0x2f   :  { %1265 = vmatpush3.bf16.msra.mxu1 %v1264_v11  ;;  %v1284_v9 = vpack.c.bf16 %v142_v3, %v141_v1  ;;  %v159_v11 = vld [vmem:[%s2296_s1 + $0x400] sm:$0xff]  ;;  %v160_v12 = vld [vmem:[%s2296_s1 + $0x408] sm:$0xff]  ;;  %v1318_v14 = vpack.c.bf16 %v208_v7, %v207_v6  ;;  %v178_v17 = vld [vmem:[%s2296_s1 + $0x498] sm:$0xff] }
  0x30   :  { %1267 = vmatprep.subr.bf16.mxu1 %v1266_v16  ;;  %v191_v13 = vld [vmem:[%s2296_s1 + $0x500] sm:$0xff]  ;;  %v192_v15 = vld [vmem:[%s2296_s1 + $0x508] sm:$0xff]  ;;  %v177_v16 = vld [vmem:[%s2296_s1 + $0x490] sm:$0xff]  ;;  %v1288_v21 = vpack.c.bf16 %v160_v12, %v159_v11 }
  0x31   :  { %1237 = vmatpush3.bf16.msra.mxu0 %v1236_v22  ;;  %v209_v18 = vld [vmem:[%s2296_s1 + $0x590] sm:$0xff]  ;;  %v210_v19 = vld [vmem:[%s2296_s1 + $0x598] sm:$0xff]  ;;  %v19_v20 = vld [vmem:[%s2295_s0 + $0x20] sm:$0xff]  ;;  %v1320_v23 = vpack.c.bf16 %v192_v15, %v191_v13  ;;  %v1290_v24 = vpack.c.bf16 %v178_v17, %v177_v16 }
  0x32   :  { %1239 = vmatprep.subr.bf16.mxu0 %v1238_v26  ;;  %v21_v22 = vld [vmem:[%s2295_s0 + $0x30] sm:$0xff]  ;;  %v162_v26 = vld [vmem:[%s2296_s1 + $0x418] sm:$0xff]  ;;  %v1322_v28 = vpack.c.bf16 %v210_v19, %v209_v18  ;;  %v180_v31 = vld [vmem:[%s2296_s1 + $0x4a8] sm:$0xff] }
  0x33   :  { %1269 = vmatpush3.bf16.msra.mxu1 %v1268_v25  ;;  %v161_v25 = vld [vmem:[%s2296_s1 + $0x410] sm:$0xff]  ;;  %v194_v29 = vld [vmem:[%s2296_s1 + $0x518] sm:$0xff]  ;;  %v211_v32 = vld [vmem:[%s2296_s1 + $0x5a0] sm:$0xff] }
  0x34   :  { %1271 = vmatprep.subr.bf16.mxu1 %v1270_v30  ;;  %v193_v27 = vld [vmem:[%s2296_s1 + $0x510] sm:$0xff]  ;;  %v179_v30 = vld [vmem:[%s2296_s1 + $0x4a0] sm:$0xff]  ;;  %v212_v33 = vld [vmem:[%s2296_s1 + $0x5a8] sm:$0xff]  ;;  %v1292_v35 = vpack.c.bf16 %v162_v26, %v161_v25 }
  0x35   :  { %1241 = vmatpush3.bf16.msra.mxu0 %v1240_v36  ;;  %v24_v34 = vld [vmem:[%s2295_s0 + $0x48] sm:$0xff]  ;;  %v26_v36 = vld [vmem:[%s2295_s0 + $0x58] sm:$0xff]  ;;  %v163_v39 = vld [vmem:[%s2296_s1 + $0x420] sm:$0xff] }
  0x36   :  { %1243 = vmatprep.subr.bf16.mxu0 %v1242_v38  ;;  %v1294_v38 = vpack.c.bf16 %v180_v31, %v179_v30  ;;  %v164_v40 = vld [vmem:[%s2296_s1 + $0x428] sm:$0xff]  ;;  %v195_v41 = vld [vmem:[%s2296_s1 + $0x520] sm:$0xff]  ;;  %v181_v44 = vld [vmem:[%s2296_s1 + $0x4b0] sm:$0xff] }
  0x37   :  { %1273 = vmatpush3.bf16.msra.mxu1 %v1272_v37  ;;  %v1324_v37 = vpack.c.bf16 %v194_v29, %v193_v27  ;;  %v196_v43 = vld [vmem:[%s2296_s1 + $0x528] sm:$0xff]  ;;  %v182_v45 = vld [vmem:[%s2296_s1 + $0x4b8] sm:$0xff]  ;;  %v213_v46 = vld [vmem:[%s2296_s1 + $0x5b0] sm:$0xff] }
  0x38   :  { %1275 = vmatprep.subr.bf16.mxu1 %v1274_v42  ;;  %v1326_v42 = vpack.c.bf16 %v212_v33, %v211_v32  ;;  %v214_v47 = vld [vmem:[%s2296_s1 + $0x5b8] sm:$0xff]  ;;  %v165_v51 = vld [vmem:[%s2296_s1 + $0x430] sm:$0xff]  ;;  %v183_v56 = vld [vmem:[%s2296_s1 + $0x4c0] sm:$0xff] }
  0x39   :  { %1245 = vmatpush3.bf16.msra.mxu0 %v1244_v48  ;;  %v1296_v48 = vpack.c.bf16 %v164_v40, %v163_v39  ;;  %v166_v52 = vld [vmem:[%s2296_s1 + $0x438] sm:$0xff]  ;;  %v197_v53 = vld [vmem:[%s2296_s1 + $0x530] sm:$0xff]  ;;  %v184_v57 = vld [vmem:[%s2296_s1 + $0x4c8] sm:$0xff] }
  0x3a   :  { %1247 = vmatprep.subr.bf16.mxu0 %v1246_v50  ;;  %v1298_v50 = vpack.c.bf16 %v182_v45, %v181_v44  ;;  %v198_v55 = vld [vmem:[%s2296_s1 + $0x538] sm:$0xff]  ;;  %v215_v58 = vld [vmem:[%s2296_s1 + $0x5c0] sm:$0xff]  ;;  %v216_v59 = vld [vmem:[%s2296_s1 + $0x5c8] sm:$0xff] }
  0x3b   :  { %1277 = vmatpush3.bf16.msra.mxu1 %v1276_v49  ;;  %v1328_v49 = vpack.c.bf16 %v196_v43, %v195_v41  ;;  %v167_v63 = vld [vmem:[%s2296_s1 + $0x440] sm:$0xff]  ;;  %v168_v0 = vld [vmem:[%s2296_s1 + $0x448] sm:$0xff]  ;;  %v185_v4 = vld [vmem:[%s2296_s1 + $0x4d0] sm:$0xff] }
  0x3c   :  { %1279 = vmatprep.subr.bf16.mxu1 %v1278_v54  ;;  %v1330_v54 = vpack.c.bf16 %v214_v47, %v213_v46  ;;  %v199_v1 = vld [vmem:[%s2296_s1 + $0x540] sm:$0xff]  ;;  %v200_v3 = vld [vmem:[%s2296_s1 + $0x548] sm:$0xff]  ;;  %v186_v5 = vld [vmem:[%s2296_s1 + $0x4d8] sm:$0xff] }
  0x3d   :  { %1249 = vmatpush3.bf16.msra.mxu0 %v1248_v60  ;;  %v1300_v60 = vpack.c.bf16 %v166_v52, %v165_v51  ;;  %v217_v6 = vld [vmem:[%s2296_s1 + $0x5d0] sm:$0xff]  ;;  %v218_v7 = vld [vmem:[%s2296_s1 + $0x5d8] sm:$0xff]  ;;  %v187_v16 = vld [vmem:[%s2296_s1 + $0x4e0] sm:$0xff] }
  0x3e   :  { %1251 = vmatprep.subr.bf16.mxu0 %v1250_v62  ;;  %v1302_v62 = vpack.c.bf16 %v184_v57, %v183_v56  ;;  %v169_v11 = vld [vmem:[%s2296_s1 + $0x450] sm:$0xff]  ;;  %v170_v12 = vld [vmem:[%s2296_s1 + $0x458] sm:$0xff]  ;;  %v188_v17 = vld [vmem:[%s2296_s1 + $0x4e8] sm:$0xff] }
  0x3f   :  { %1281 = vmatpush3.bf16.msra.mxu1 %v1280_v61  ;;  %v1332_v61 = vpack.c.bf16 %v198_v55, %v197_v53  ;;  %v201_v13 = vld [vmem:[%s2296_s1 + $0x550] sm:$0xff]  ;;  %v202_v15 = vld [vmem:[%s2296_s1 + $0x558] sm:$0xff]  ;;  %v219_v18 = vld [vmem:[%s2296_s1 + $0x5e0] sm:$0xff] }
  0x40   :  { %1283 = vmatprep.subr.bf16.mxu1 %v1282_v2  ;;  %v1334_v2 = vpack.c.bf16 %v216_v59, %v215_v58  ;;  %v220_v19 = vld [vmem:[%s2296_s1 + $0x5e8] sm:$0xff]  ;;  %v203_v25 = vld [vmem:[%s2296_s1 + $0x560] sm:$0xff]  ;;  %v190_v29 = vld [vmem:[%s2296_s1 + $0x4f8] sm:$0xff] }
  0x41   :  { %1253 = vmatpush3.bf16.msra.mxu0 %v1252_v8  ;;  %v1304_v8 = vpack.c.bf16 %v168_v0, %v167_v63  ;;  %v1342_v26 = vpack.c.bf16 %v220_v19, %v219_v18  ;;  %v204_v27 = vld [vmem:[%s2296_s1 + $0x568] sm:$0xff]  ;;  %v221_v30 = vld [vmem:[%s2296_s1 + $0x5f0] sm:$0xff]  ;;  %v222_v31 = vld [vmem:[%s2296_s1 + $0x5f8] sm:$0xff] }
  0x42   :  { %1287 = vmatprep.subr.bf16.mxu0 %v1286_v10  ;;  %v1306_v10 = vpack.c.bf16 %v186_v5, %v185_v4  ;;  %v173_v33 = vld [vmem:[%s2296_s1 + $0x470] sm:$0xff]  ;;  %v1346_v39 = vpack.c.bf16 %v222_v31, %v221_v30  ;;  %v239_v40 = vld [vmem:[%s2296_s1 + $0x680] sm:$0xff]  ;;  %v240_v41 = vld [vmem:[%s2296_s1 + $0x688] sm:$0xff] }
  0x43   :  { %1285 = vmatpush3.bf16.msra.mxu1 %v1284_v9  ;;  %v1336_v9 = vpack.c.bf16 %v200_v3, %v199_v1 }
  0x44   :  { %1319 = vmatprep.subr.bf16.mxu1 %v1318_v14  ;;  %499 = vmatmul.mubr.f32.vlgmr.msra.gmra.mrb[2].mxu0 %v19_v20  ;;  %v1338_v14 = vpack.c.bf16 %v218_v7, %v217_v6  ;;  %v1308_v20 = vpack.c.bf16 %v170_v12, %v169_v11 }
  0x45   :  { %1289 = vmatpush3.bf16.msra.mxu0 %v1288_v21  ;;  %638 = vmatprep.mubr.f32.mxu0 %v24_v34  ;;  %v1340_v21 = vpack.c.bf16 %v202_v15, %v201_v13  ;;  %v1344_v34 = vpack.c.bf16 %v204_v27, %v203_v25 }
  0x46   :  { %569 = vmatmul.mubr.f32.vlgmr.msra.gmra.mrb[2].mxu1 %v21_v22  ;;  %1291 = vmatprep.subr.bf16.mxu0 %v1290_v24  ;;  %v1310_v22 = vpack.c.bf16 %v188_v17, %v187_v16  ;;  %v172_v24 = vld [vmem:[%s2296_s1 + $0x468] sm:$0xff] }
  0x47   :  { %1321 = vmatpush3.bf16.msra.mxu1 %v1320_v23  ;;  %708 = vmatprep.mubr.f32.mxu1 %v26_v36  ;;  %v171_v23 = vld [vmem:[%s2296_s1 + $0x460] sm:$0xff]  ;;  %v174_v36 = vld [vmem:[%s2296_s1 + $0x478] sm:$0xff] }
  0x48   :  { %1323 = vmatprep.subr.bf16.mxu1 %v1322_v28  ;;  %v189_v28 = vld [vmem:[%s2296_s1 + $0x4f0] sm:$0xff]  ;;  %v1312_v32 = vpack.c.bf16 %v172_v24, %v171_v23 }
  0x49   :  { %1293 = vmatpush3.bf16.msra.mxu0 %v1292_v35  ;;  %v1314_v35 = vpack.c.bf16 %v190_v29, %v189_v28 }
  0x4a   :  { %1295 = vmatprep.subr.bf16.mxu0 %v1294_v38  ;;  %v206_v38 = vld [vmem:[%s2296_s1 + $0x578] sm:$0xff] }
  0x4b   :  { %1325 = vmatpush3.bf16.msra.mxu1 %v1324_v37  ;;  %v205_v37 = vld [vmem:[%s2296_s1 + $0x570] sm:$0xff] }
  0x4c   :  { %1327 = vmatprep.subr.bf16.mxu1 %v1326_v42 }
  0x4d   :  { %1297 = vmatpush3.bf16.msra.mxu0 %v1296_v48 }
  0x4e   :  { %1299 = vmatprep.subr.bf16.mxu0 %v1298_v50 }
  0x4f   :  { %1329 = vmatpush3.bf16.msra.mxu1 %v1328_v49 }
  0x50   :  { %1331 = vmatprep.subr.bf16.mxu1 %v1330_v54 }
  0x51   :  { %1301 = vmatpush3.bf16.msra.mxu0 %v1300_v60 }
  0x52   :  { %1303 = vmatprep.subr.bf16.mxu0 %v1302_v62 }
  0x53   :  { %1333 = vmatpush3.bf16.msra.mxu1 %v1332_v61 }
  0x54   :  { %1335 = vmatprep.subr.bf16.mxu1 %v1334_v2 }
  0x55   :  { %1305 = vmatpush3.bf16.msra.mxu0 %v1304_v8 }
  0x56   :  { %1307 = vmatprep.subr.bf16.mxu0 %v1306_v10 }
  0x57   :  { %1337 = vmatpush3.bf16.msra.mxu1 %v1336_v9 }
  0x58   :  { %1339 = vmatprep.subr.bf16.mxu1 %v1338_v14 }
  0x59   :  { %1309 = vmatpush3.bf16.msra.mxu0 %v1308_v20 }
  0x5a   :  { %1311 = vmatprep.subr.bf16.mxu0 %v1310_v22 }
  0x5b   :  { %1341 = vmatpush3.bf16.msra.mxu1 %v1340_v21 }
  0x5c   :  { %1343 = vmatprep.subr.bf16.mxu1 %v1342_v26 }
  0x5d   :  { %8 = vsyncpa [#allocation3], 0  ;;  %v271_v42 = vld [vmem:[%s2296_s1 + $0x780] sm:$0xff]  ;;  %v272_v43 = vld [vmem:[%s2296_s1 + $0x788] sm:$0xff]  ;;  %1313 = vmatpush3.bf16.msra.mxu0 %v1312_v32  ;;  %v1316_v44 = vpack.c.bf16 %v174_v36, %v173_v33  ;;  %v1348_v45 = vpack.c.bf16 %v206_v38, %v205_v37  ;;  %v1350_v46 = vpack.c.bf16 %v240_v41, %v239_v40  ;;  %vm860_vm0 = vcmask 97280  }
  0x5e   :  { %1315 = vmatprep.subr.bf16.mxu0 %v1314_v35  ;;  %v223_v47 = vld [vmem:[%s2296_s1 + $0x600] sm:$0xff]  ;;  %v224_v48 = vld [vmem:[%s2296_s1 + $0x608] sm:$0xff]  ;;  %v1382_v50 = vpack.c.bf16 %v272_v43, %v271_v42  ;;  %v241_v52 = vld [vmem:[%s2296_s1 + $0x690] sm:$0xff] }
  0x5f   :  { %1345 = vmatpush3.bf16.msra.mxu1 %v1344_v34  ;;  %v255_v49 = vld [vmem:[%s2296_s1 + $0x700] sm:$0xff]  ;;  %v256_v51 = vld [vmem:[%s2296_s1 + $0x708] sm:$0xff]  ;;  %v242_v53 = vld [vmem:[%s2296_s1 + $0x698] sm:$0xff]  ;;  %v1352_v57 = vpack.c.bf16 %v224_v48, %v223_v47 }
  0x60   :  { %1347 = vmatprep.subr.bf16.mxu1 %v1346_v39  ;;  %v273_v54 = vld [vmem:[%s2296_s1 + $0x790] sm:$0xff]  ;;  %v274_v55 = vld [vmem:[%s2296_s1 + $0x798] sm:$0xff]  ;;  %v23_v56 = vld [vmem:[%s2295_s0 + $0x40] sm:$0xff]  ;;  %v1384_v59 = vpack.c.bf16 %v256_v51, %v255_v49  ;;  %v1354_v60 = vpack.c.bf16 %v242_v53, %v241_v52 }
  0x61   :  { %1317 = vmatpush3.bf16.msra.mxu0 %v1316_v44  ;;  %v25_v58 = vld [vmem:[%s2295_s0 + $0x50] sm:$0xff]  ;;  %v226_v62 = vld [vmem:[%s2296_s1 + $0x618] sm:$0xff]  ;;  %v1386_v0 = vpack.c.bf16 %v274_v55, %v273_v54  ;;  %v243_v2 = vld [vmem:[%s2296_s1 + $0x6a0] sm:$0xff] }
  0x62   :  { %1351 = vmatprep.subr.bf16.mxu0 %v1350_v46  ;;  %v225_v61 = vld [vmem:[%s2296_s1 + $0x610] sm:$0xff]  ;;  %v258_v1 = vld [vmem:[%s2296_s1 + $0x718] sm:$0xff]  ;;  %v244_v3 = vld [vmem:[%s2296_s1 + $0x6a8] sm:$0xff] }
  0x63   :  { %1349 = vmatpush3.bf16.msra.mxu1 %v1348_v45  ;;  %v257_v63 = vld [vmem:[%s2296_s1 + $0x710] sm:$0xff]  ;;  %v275_v4 = vld [vmem:[%s2296_s1 + $0x7a0] sm:$0xff]  ;;  %v276_v5 = vld [vmem:[%s2296_s1 + $0x7a8] sm:$0xff]  ;;  %v1356_v7 = vpack.c.bf16 %v226_v62, %v225_v61  ;;  %v1358_v10 = vpack.c.bf16 %v244_v3, %v243_v2 }
  0x64   :  { %1383 = vmatprep.subr.bf16.mxu1 %v1382_v50  ;;  %639 = vmatmul.mubr.f32.vlgmr.msra.gmra.mrb[4].mxu0 %v23_v56  ;;  %v28_v6 = vld [vmem:[%s2295_s0 + $0x68] sm:$0xff]  ;;  %v30_v8 = vld [vmem:[%s2295_s0 + $0x78] sm:$0xff]  ;;  %v1388_v9 = vpack.c.bf16 %v258_v1, %v257_v63  ;;  %v227_v11 = vld [vmem:[%s2296_s1 + $0x620] sm:$0xff]  ;;  %v1390_v14 = vpack.c.bf16 %v276_v5, %v275_v4 }
  0x65   :  { %1353 = vmatpush3.bf16.msra.mxu0 %v1352_v57  ;;  %v228_v12 = vld [vmem:[%s2296_s1 + $0x628] sm:$0xff]  ;;  %v259_v13 = vld [vmem:[%s2296_s1 + $0x720] sm:$0xff]  ;;  %v245_v16 = vld [vmem:[%s2296_s1 + $0x6b0] sm:$0xff]  ;;  %778 = vmatprep.mubr.f32.mxu0 %v28_v6 }
  0x66   :  { %709 = vmatmul.mubr.f32.vlgmr.msra.gmra.mrb[4].mxu1 %v25_v58  ;;  %1355 = vmatprep.subr.bf16.mxu0 %v1354_v60  ;;  %v260_v15 = vld [vmem:[%s2296_s1 + $0x728] sm:$0xff]  ;;  %v246_v17 = vld [vmem:[%s2296_s1 + $0x6b8] sm:$0xff]  ;;  %v277_v18 = vld [vmem:[%s2296_s1 + $0x7b0] sm:$0xff]  ;;  %v1360_v20 = vpack.c.bf16 %v228_v12, %v227_v11 }
  0x67   :  { %1385 = vmatpush3.bf16.msra.mxu1 %v1384_v59  ;;  %v278_v19 = vld [vmem:[%s2296_s1 + $0x7b8] sm:$0xff]  ;;  %848 = vmatprep.mubr.f32.mxu1 %v30_v8  ;;  %v1392_v21 = vpack.c.bf16 %v260_v15, %v259_v13  ;;  %v1362_v22 = vpack.c.bf16 %v246_v17, %v245_v16  ;;  %v229_v23 = vld [vmem:[%s2296_s1 + $0x630] sm:$0xff]  ;;  %v247_v28 = vld [vmem:[%s2296_s1 + $0x6c0] sm:$0xff] }
  0x68   :  { %1387 = vmatprep.subr.bf16.mxu1 %v1386_v0  ;;  %v230_v24 = vld [vmem:[%s2296_s1 + $0x638] sm:$0xff]  ;;  %v261_v25 = vld [vmem:[%s2296_s1 + $0x730] sm:$0xff]  ;;  %v1394_v26 = vpack.c.bf16 %v278_v19, %v277_v18  ;;  %v248_v29 = vld [vmem:[%s2296_s1 + $0x6c8] sm:$0xff] }
  0x69   :  { %1357 = vmatpush3.bf16.msra.mxu0 %v1356_v7  ;;  %v262_v27 = vld [vmem:[%s2296_s1 + $0x738] sm:$0xff]  ;;  %v279_v30 = vld [vmem:[%s2296_s1 + $0x7c0] sm:$0xff]  ;;  %v280_v31 = vld [vmem:[%s2296_s1 + $0x7c8] sm:$0xff]  ;;  %v1364_v32 = vpack.c.bf16 %v230_v24, %v229_v23  ;;  %v1366_v34 = vpack.c.bf16 %v248_v29, %v247_v28 }
  0x6a   :  { %1359 = vmatprep.subr.bf16.mxu0 %v1358_v10  ;;  %v1396_v33 = vpack.c.bf16 %v262_v27, %v261_v25  ;;  %v231_v35 = vld [vmem:[%s2296_s1 + $0x640] sm:$0xff]  ;;  %v232_v36 = vld [vmem:[%s2296_s1 + $0x648] sm:$0xff]  ;;  %v1398_v38 = vpack.c.bf16 %v280_v31, %v279_v30  ;;  %v249_v40 = vld [vmem:[%s2296_s1 + $0x6d0] sm:$0xff] }
  0x6b   :  { %1389 = vmatpush3.bf16.msra.mxu1 %v1388_v9  ;;  %v263_v37 = vld [vmem:[%s2296_s1 + $0x740] sm:$0xff]  ;;  %v264_v39 = vld [vmem:[%s2296_s1 + $0x748] sm:$0xff]  ;;  %v250_v41 = vld [vmem:[%s2296_s1 + $0x6d8] sm:$0xff]  ;;  %v1368_v44 = vpack.c.bf16 %v232_v36, %v231_v35 }
  0x6c   :  { %1391 = vmatprep.subr.bf16.mxu1 %v1390_v14  ;;  %v281_v42 = vld [vmem:[%s2296_s1 + $0x7d0] sm:$0xff]  ;;  %v282_v43 = vld [vmem:[%s2296_s1 + $0x7d8] sm:$0xff]  ;;  %v1400_v45 = vpack.c.bf16 %v264_v39, %v263_v37  ;;  %v1370_v46 = vpack.c.bf16 %v250_v41, %v249_v40  ;;  %v251_v52 = vld [vmem:[%s2296_s1 + $0x6e0] sm:$0xff] }
  0x6d   :  { %1361 = vmatpush3.bf16.msra.mxu0 %v1360_v20  ;;  %v233_v47 = vld [vmem:[%s2296_s1 + $0x650] sm:$0xff]  ;;  %v234_v48 = vld [vmem:[%s2296_s1 + $0x658] sm:$0xff]  ;;  %v1402_v50 = vpack.c.bf16 %v282_v43, %v281_v42  ;;  %v252_v53 = vld [vmem:[%s2296_s1 + $0x6e8] sm:$0xff] }
  0x6e   :  { %1363 = vmatprep.subr.bf16.mxu0 %v1362_v22  ;;  %v265_v49 = vld [vmem:[%s2296_s1 + $0x750] sm:$0xff]  ;;  %v266_v51 = vld [vmem:[%s2296_s1 + $0x758] sm:$0xff]  ;;  %v283_v54 = vld [vmem:[%s2296_s1 + $0x7e0] sm:$0xff]  ;;  %v1372_v56 = vpack.c.bf16 %v234_v48, %v233_v47  ;;  %v1374_v58 = vpack.c.bf16 %v252_v53, %v251_v52 }
  0x6f   :  { %1393 = vmatpush3.bf16.msra.mxu1 %v1392_v21  ;;  %v284_v55 = vld [vmem:[%s2296_s1 + $0x7e8] sm:$0xff]  ;;  %v1404_v57 = vpack.c.bf16 %v266_v51, %v265_v49  ;;  %v235_v59 = vld [vmem:[%s2296_s1 + $0x660] sm:$0xff]  ;;  %v253_v0 = vld [vmem:[%s2296_s1 + $0x6f0] sm:$0xff] }
  0x70   :  { %1395 = vmatprep.subr.bf16.mxu1 %v1394_v26  ;;  %v236_v60 = vld [vmem:[%s2296_s1 + $0x668] sm:$0xff]  ;;  %v267_v61 = vld [vmem:[%s2296_s1 + $0x760] sm:$0xff]  ;;  %v1406_v62 = vpack.c.bf16 %v284_v55, %v283_v54  ;;  %v254_v1 = vld [vmem:[%s2296_s1 + $0x6f8] sm:$0xff] }
  0x71   :  { %1365 = vmatpush3.bf16.msra.mxu0 %v1364_v32  ;;  %v268_v63 = vld [vmem:[%s2296_s1 + $0x768] sm:$0xff]  ;;  %v285_v2 = vld [vmem:[%s2296_s1 + $0x7f0] sm:$0xff]  ;;  %v286_v3 = vld [vmem:[%s2296_s1 + $0x7f8] sm:$0xff]  ;;  %v1376_v4 = vpack.c.bf16 %v236_v60, %v235_v59  ;;  %v1378_v6 = vpack.c.bf16 %v254_v1, %v253_v0 }
  0x72   :  { %1367 = vmatprep.subr.bf16.mxu0 %v1366_v34  ;;  %v1408_v5 = vpack.c.bf16 %v268_v63, %v267_v61  ;;  %v237_v7 = vld [vmem:[%s2296_s1 + $0x670] sm:$0xff]  ;;  %v238_v8 = vld [vmem:[%s2296_s1 + $0x678] sm:$0xff]  ;;  %v1410_v9 = vpack.c.bf16 %v286_v3, %v285_v2  ;;  %v27_v14 = vld [vmem:[%s2295_s0 + $0x60] sm:$0xff] }
  0x73   :  { %1397 = vmatpush3.bf16.msra.mxu1 %v1396_v33  ;;  %v269_v10 = vld [vmem:[%s2296_s1 + $0x770] sm:$0xff]  ;;  %v270_v11 = vld [vmem:[%s2296_s1 + $0x778] sm:$0xff]  ;;  %v1380_v12 = vpack.c.bf16 %v238_v8, %v237_v7  ;;  %v876_v17 = vld [vmem:[%s2297_s2] ss:$0 sm:$0xff] }
  0x74   :  { %1399 = vmatprep.subr.bf16.mxu1 %v1398_v38  ;;  %v1412_v13 = vpack.c.bf16 %v270_v11, %v269_v10  ;;  %v29_v15 = vld [vmem:[%s2295_s0 + $0x70] sm:$0xff]  ;;  %s1443_s0 = smov [#allocation2]  }
  0x75   :  { %1369 = vmatpush3.bf16.msra.mxu0 %v1368_v44  ;;  %s868_s2 = sshll.u32 %s1443_s0, 4  ;;  %s869_s2 = int_to_ptr.vmem [resolvable:$true] %s868_s2 }
  0x76   :  { %1371 = vmatprep.subr.bf16.mxu0 %v1370_v46  ;;  %s1419_s17 = scalar_lea.vmem %s869_s2, 128  ;;  %p1424_p1 = scmp.lt.s32.totalorder %s869_s2, %s869_s2 }
  0x77   :  { %1401 = vmatpush3.bf16.msra.mxu1 %v1400_v45  ;;  %p1420_p0 = scmp.ne.s32.totalorder %s869_s2, %s1419_s17  ;;  %p1425_p2 = scmp.lt.s32.totalorder %s1419_s17, %s1419_s17 }
  0x78   :  { %1403 = vmatprep.subr.bf16.mxu1 %v1402_v50 }
  0x79   :  { %1373 = vmatpush3.bf16.msra.mxu0 %v1372_v56  ;;  %p1426_p3 = por %p1425_p2, %p1424_p1 }
  0x7a   :  { %1375 = vmatprep.subr.bf16.mxu0 %v1374_v58 }
  0x7b   :  { %1405 = vmatpush3.bf16.msra.mxu1 %v1404_v57  ;;  %p1427_p4 = pnand %p1426_p3, %p1420_p0 }
  0x7c   :  { %1407 = vmatprep.subr.bf16.mxu1 %v1406_v62 }
  0x7d   :  { %1377 = vmatpush3.bf16.msra.mxu0 %v1376_v4 }
  0x7e   :  { %1379 = vmatprep.subr.bf16.mxu0 %v1378_v6 }
  0x7f   :  { %1409 = vmatpush3.bf16.msra.mxu1 %v1408_v5 }
  0x80   :  { %1411 = vmatprep.subr.bf16.mxu1 %v1410_v9 }
  0x81   :  { %1381 = vmatpush3.bf16.msra.mxu0 %v1380_v12 }
  0x83   :  { %1413 = vmatpush3.bf16.msra.mxu1 %v1412_v13 }
  0x84   :  { %779 = vmatmul.mubr.f32.vlgmr.msra.gmra.mrb[6].mxu0 %v27_v14 }
  0x86   :  { %849 = vmatmul.mubr.f32.vlgmr.msra.gmra.mrb[6].mxu1 %v29_v15 }
  0xf7   :  { %v910_v16 = vpop.f32.mrb[0].mxu0 }
  0xf8   :  { %v911_v18 = vpop.f32.mrb[1].mxu0 }
  0xf9   :  { %v945_v19 = vpop.f32.mrb[0].mxu1  ;;  %v912_v20 = vadd.f32 %v911_v18, %v910_v16 }
  0xfa   :  { %v946_v21 = vpop.f32.mrb[1].mxu1 }
  0xfb   :  { %v947_v22 = vadd.f32 %v946_v21, %v945_v19  ;;  %v361_v23 = vadd.f32 %v912_v20, %v876_v17 }
  0xfd   :  { %v431_v24 = vadd.f32 %v947_v22, %v361_v23 }
 0x117   :  { %v980_v25 = vpop.f32.mrb[2].mxu0 }
 0x118   :  { %v981_v26 = vpop.f32.mrb[3].mxu0 }
 0x119   :  { %v1015_v27 = vpop.f32.mrb[2].mxu1  ;;  %v982_v28 = vadd.f32 %v981_v26, %v980_v25 }
 0x11a   :  { %v1016_v29 = vpop.f32.mrb[3].mxu1 }
 0x11b   :  { %v1017_v30 = vadd.f32 %v1016_v29, %v1015_v27  ;;  %v501_v31 = vadd.f32 %v982_v28, %v431_v24 }
 0x11d   :  { %v571_v32 = vadd.f32 %v1017_v30, %v501_v31 }
 0x137   :  { %v1050_v33 = vpop.f32.mrb[4].mxu0 }
 0x138   :  { %v1051_v34 = vpop.f32.mrb[5].mxu0 }
 0x139   :  { %v1085_v35 = vpop.f32.mrb[4].mxu1  ;;  %v1052_v36 = vadd.f32 %v1051_v34, %v1050_v33 }
 0x13a   :  { %v1086_v37 = vpop.f32.mrb[5].mxu1 }
 0x13b   :  { %v1087_v38 = vadd.f32 %v1086_v37, %v1085_v35  ;;  %v641_v39 = vadd.f32 %v1052_v36, %v571_v32 }
 0x13d   :  { %v711_v40 = vadd.f32 %v1087_v38, %v641_v39 }
 0x157   :  { %v1120_v41 = vpop.f32.mrb[6].mxu0 }
 0x158   :  { %v1121_v42 = vpop.f32.mrb[7].mxu0 }
 0x159   :  { %v1155_v43 = vpop.f32.mrb[6].mxu1  ;;  %v1122_v44 = vadd.f32 %v1121_v42, %v1120_v41 }
 0x15a   :  { %v1156_v45 = vpop.f32.mrb[7].mxu1 }
 0x15b   :  { %v1157_v46 = vadd.f32 %v1156_v45, %v1155_v43  ;;  %v781_v47 = vadd.f32 %v1122_v44, %v711_v40 }
 0x15d   :  { %v851_v48 = vadd.f32 %v1157_v46, %v781_v47 }
 0x15f   :  { %v877_v49 = vmul.f32 -1.442695, %v851_v48 }
 0x161   :  { %1415 = vpow2.f32 %v877_v49 }
 0x16b   :  { %v1416_v50 = vpop.eup %1415 }
 0x16c   :  { %v857_v51 = vadd.f32 1.0, %v1416_v50 }
 0x16e   :  { %1417 = vrcp.f32 %v857_v51 }
 0x178   :  { %v1418_v52 = vpop.eup %1417 }
 0x179   :  { %861 = vst.msk [vmem:[#allocation2] sm:$0xff] %vm860_vm0, %v1418_v52 }
 0x17a   :  { %1430 = shalt.err (!%p1427_p4)
}
 0x17b   :  { %s1431_s20 = scalar_lea.hbm %s2298_s3, 128 }
 0x17c   :  { %p1432_p5 = scmp.ne.s32.totalorder %s2298_s3, %s1431_s20  ;;  %p1435_p6 = scmp.lt.u32.totalorder %s1431_s20, %s2298_s3 }
 0x17e   :  { %p1437_p7 = pnand %p1435_p6, %p1432_p5 }
 0x180   :  { %1440 = shalt.err (!%p1437_p7)
}
 0x181   :  { %871 = dma.vmem_to_hbm [thread:$0]  %s869_s2, 128, %s2298_s3, [#allocation3]  }
 0x182   :  { %1441 = dma.done.wait [#allocation3], 128  }
 0x183   :  { %1442 = vsyncadd [#allocation3], 4294967168 }
 0x184   :  { %875 = vsyncpa [#allocation3], 1 }

</bundles_post_ra>
